<compile_context>
chip_gen: v7x
topology: tpu7x:2x2x1
jax: 0.10.0
libtpu: 0.0.40
codegen_flags: <defaults>
</compile_context>

<pallas_src>
import math
from functools import partial

import jax
import jax.numpy as jnp
from jax import lax
from jax.experimental import pallas as pl
from jax.experimental.pallas import tpu as pltpu

NEG_BIG = -1e30  # finite "-inf": avoids exp(-inf - -inf) NaNs on masked rows


def _flash_mha_kernel(xq_ref, xkv_ref, wq_ref, wkv_ref, o_ref,
                      q_scr, m_scr, l_scr, acc_scr,
                      *, num_heads, d_out, tq, tk):
    """One grid step == one (q-tile, kv-tile) pair, all heads at once.

    xq_ref : (B, tq, d_in)       q-side input tile
    xkv_ref: (B, tk, d_in)       kv-side input tile
    wq_ref : (d_in, H*d_out)     fused query weights (head-major)
    wkv_ref: (d_in, 2*H*d_out)   fused [key | value] weights (head-major)
    o_ref  : (B, tq, H*d_out)    concatenated-head output tile
    """
    qi = pl.program_id(0)
    ki = pl.program_id(1)
    n_k = pl.num_programs(1)

    B = xq_ref.shape[0]
    HD = num_heads * d_out
    q_start = qi * tq
    k_start = ki * tk

    # ---- per q-tile init (first kv step): fused Q projection + zero stats ----
    @pl.when(ki == 0)
    def _():
        xq = xq_ref[...].astype(jnp.float32)                          # (B,tq,d_in)
        q = jnp.einsum("btd,de->bte", xq, wq_ref[...].astype(jnp.float32),
                       preferred_element_type=jnp.float32)            # (B,tq,HD)
        q_scr[...] = q * (1.0 / math.sqrt(d_out))  # fold 1/sqrt(d_k) into Q
        m_scr[...] = jnp.full(m_scr.shape, NEG_BIG, jnp.float32)
        l_scr[...] = jnp.zeros(l_scr.shape, jnp.float32)
        acc_scr[...] = jnp.zeros(acc_scr.shape, jnp.float32)

    # ---- causal pruning: skip kv tiles strictly above the diagonal ----
    @pl.when(k_start < q_start + tq)
    def _():
        xkv = xkv_ref[...].astype(jnp.float32)                        # (B,tk,d_in)
        kv = jnp.einsum("btd,de->bte", xkv, wkv_ref[...].astype(jnp.float32),
                        preferred_element_type=jnp.float32)           # (B,tk,2*HD)

        rows = q_start + lax.broadcasted_iota(jnp.int32, (tq, tk), 0)
        cols = k_start + lax.broadcasted_iota(jnp.int32, (tq, tk), 1)
        future = cols > rows                                          # (tq,tk)

        q_all = q_scr[...]                                            # (B,tq,HD)
        for h in range(num_heads):                                    # static unroll
            sl = slice(h * d_out, (h + 1) * d_out)
            q_h = q_all[:, :, sl]                                     # (B,tq,d_out)
            k_h = kv[:, :, sl]                                        # (B,tk,d_out)
            v_h = kv[:, :, HD + h * d_out: HD + (h + 1) * d_out]      # (B,tk,d_out)

            s = jnp.einsum("bqe,bke->bqk", q_h, k_h,
                           preferred_element_type=jnp.float32)        # (B,tq,tk)
            s = jnp.where(future[None], NEG_BIG, s)

            m_prev = m_scr[h]                                         # (B,tq,1)
            m_new = jnp.maximum(m_prev, s.max(axis=-1, keepdims=True))
            alpha = jnp.exp(m_prev - m_new)
            p = jnp.exp(s - m_new)
            l_scr[h] = alpha * l_scr[h] + p.sum(axis=-1, keepdims=True)
            acc_scr[h] = alpha * acc_scr[h] + jnp.einsum(
                "bqk,bke->bqe", p, v_h, preferred_element_type=jnp.float32)
            m_scr[h] = m_new

    # ---- finalize on last kv step: normalize, write concatenated heads ----
    @pl.when(ki == n_k - 1)
    def _():
        for h in range(num_heads):
            inv_l = pl.reciprocal(l_scr[h], approx=True)              # EUP vrcp
            ctx = acc_scr[h] * inv_l                                  # (B,tq,d_out)
            o_ref[:, :, h * d_out:(h + 1) * d_out] = ctx.astype(o_ref.dtype)


def _pick_tile(T, preferred=(512, 256, 128)):
    """Largest convenient tile: full extent when small, else a divisor of T."""
    if T <= preferred[-1]:
        return T
    for t in preferred:
        if T % t == 0:
            return t
    return T  # fallback: single full-extent tile


def multi_head_attention_wrapper(x, wq, wk, wv, *, q_tile=None, kv_tile=None):
    """x: (B, T, d_in); wq/wk/wv: (H, d_in, d_out). Returns (B, T, H*d_out)."""
    B, T, d_in = x.shape
    H, _, d_out = wq.shape
    HD = H * d_out

    # Fuse per-head projections: one Q weight matrix, one [K|V] weight matrix.
    w_q_fused = jnp.transpose(wq, (1, 0, 2)).reshape(d_in, HD)        # (d_in, HD)
    wk_flat = jnp.transpose(wk, (1, 0, 2)).reshape(d_in, HD)
    wv_flat = jnp.transpose(wv, (1, 0, 2)).reshape(d_in, HD)
    w_kv_fused = jnp.concatenate([wk_flat, wv_flat], axis=-1)         # (d_in, 2HD)

    tq = q_tile if q_tile is not None else _pick_tile(T)
    tk = kv_tile if kv_tile is not None else _pick_tile(T)
    assert T % tq == 0 and T % tk == 0, (T, tq, tk)
    nq, nk = T // tq, T // tk

    kernel = partial(_flash_mha_kernel,
                     num_heads=H, d_out=d_out, tq=tq, tk=tk)

    return pl.pallas_call(
        kernel,
        out_shape=jax.ShapeDtypeStruct((B, T, HD), x.dtype),
        grid_spec=pltpu.PrefetchScalarGridSpec(
            num_scalar_prefetch=0,
            grid=(nq, nk),                       # kv (reduction) axis last
            in_specs=[
                pl.BlockSpec((B, tq, d_in), lambda qi, ki: (0, qi, 0)),
                pl.BlockSpec((B, tk, d_in), lambda qi, ki: (0, ki, 0)),
                pl.BlockSpec((d_in, HD), lambda qi, ki: (0, 0)),
                pl.BlockSpec((d_in, 2 * HD), lambda qi, ki: (0, 0)),
            ],
            # Concatenated-head output written directly (no wrapper transpose).
            out_specs=pl.BlockSpec((B, tq, HD), lambda qi, ki: (0, qi, 0)),
            scratch_shapes=[
                pltpu.VMEM((B, tq, HD), jnp.float32),        # scaled Q (per q-tile)
                pltpu.VMEM((H, B, tq, 1), jnp.float32),      # running max m
                pltpu.VMEM((H, B, tq, 1), jnp.float32),      # running sum l
                pltpu.VMEM((H, B, tq, d_out), jnp.float32),  # output accumulator
            ],
        ),
        compiler_params=pltpu.CompilerParams(
            dimension_semantics=("parallel", "arbitrary"),
            vmem_limit_bytes=32 * 1024 * 1024,
        ),
    )(x, x, w_q_fused, w_kv_fused)


def reference_multi_head_attention(x, wq, wk, wv):
    """Pure-JAX reference matching the PyTorch forward (eval mode)."""
    B, T, d_in = x.shape
    H, _, d_out = wq.shape
    outs = []
    for h in range(H):
        q = x @ wq[h]
        k = x @ wk[h]
        v = x @ wv[h]
        scores = jnp.einsum("bqe,bke->bqk", q, k)
        mask = jnp.triu(jnp.ones((T, T), dtype=bool), k=1)
        scores = jnp.where(mask[None], -jnp.inf, scores)
        w = jax.nn.softmax(scores / math.sqrt(d_out), axis=-1)
        outs.append(jnp.einsum("bqk,bke->bqe", w, v))
    return jnp.concatenate(outs, axis=-1)


if __name__ == "__main__":
    # Inputs mirror the PyTorch script: 6 tokens x 3 features, batched twice.
    inputs = jnp.array(
        [[0.43, 0.15, 0.89],
         [0.55, 0.87, 0.66],
         [0.57, 0.85, 0.64],
         [0.22, 0.58, 0.33],
         [0.77, 0.25, 0.10],
         [0.05, 0.80, 0.55]], dtype=jnp.float32)
    x = jnp.stack([inputs, inputs], axis=0)          # (B=2, T=6, d_in=3)

    d_in = x.shape[-1]            # 3
    d_out = 2
    context_length = x.shape[1]   # 6
    num_heads = 2

    # Deterministic parameter init (stand-in for nn.Linear weights, transposed).
    key = jax.random.PRNGKey(0)
    kq, kk, kv_ = jax.random.split(key, 3)
    bound = 1.0 / math.sqrt(d_in)
    wq = jax.random.uniform(kq, (num_heads, d_in, d_out), jnp.float32, -bound, bound)
    wk = jax.random.uniform(kk, (num_heads, d_in, d_out), jnp.float32, -bound, bound)
    wv = jax.random.uniform(kv_, (num_heads, d_in, d_out), jnp.float32, -bound, bound)

    out = jax.block_until_ready(multi_head_attention_wrapper(x, wq, wk, wv))
    ref = reference_multi_head_attention(x, wq, wk, wv)
    assert out.shape == (2, context_length, num_heads * d_out), out.shape
    assert jnp.allclose(out, ref, atol=2e-3, rtol=2e-3), "mismatch vs reference (toy)"

    # Second check: exercises (tq, tk) tiling, causal tile pruning and the
    # online-softmax accumulation across multiple kv steps.
    B2, T2, d_in2, d_out2, H2 = 2, 256, 16, 32, 4
    k1, k2, k3, k4 = jax.random.split(jax.random.PRNGKey(0), 4)
    x2 = jax.random.normal(k1, (B2, T2, d_in2), jnp.float32)
    wq2 = jax.random.normal(k2, (H2, d_in2, d_out2), jnp.float32) * 0.1
    wk2 = jax.random.normal(k3, (H2, d_in2, d_out2), jnp.float32) * 0.1
    wv2 = jax.random.normal(k4, (H2, d_in2, d_out2), jnp.float32) * 0.1
    out2 = jax.block_until_ready(
        multi_head_attention_wrapper(x2, wq2, wk2, wv2, q_tile=128, kv_tile=128))
    ref2 = reference_multi_head_attention(x2, wq2, wk2, wv2)
    assert out2.shape == (B2, T2, H2 * d_out2), out2.shape
    assert jnp.allclose(out2, ref2, atol=2e-3, rtol=2e-3), "mismatch vs reference (tiled)"

    print("KERNEL_OK")
</pallas_src>

<mosaic_0001>
module attributes {stable_mosaic.version = 11 : i64} {
  func.func @_flash_mha_kernel(%arg0: i32, %arg1: i32, %arg2: memref<2x6x3xf32, #tpu.memory_space<vmem>>, %arg3: memref<2x6x3xf32, #tpu.memory_space<vmem>>, %arg4: memref<3x4xf32, #tpu.memory_space<vmem>>, %arg5: memref<3x8xf32, #tpu.memory_space<vmem>>, %arg6: memref<2x6x4xf32, #tpu.memory_space<vmem>>, %arg7: memref<2x6x4xf32, #tpu.memory_space<vmem>>, %arg8: memref<2x2x6x1xf32, #tpu.memory_space<vmem>>, %arg9: memref<2x2x6x1xf32, #tpu.memory_space<vmem>>, %arg10: memref<2x2x6x2xf32, #tpu.memory_space<vmem>>) attributes {dimension_semantics = [#tpu.dimension_semantics<parallel>, #tpu.dimension_semantics<arbitrary>], iteration_bounds = array<i64: 1, 1>, scalar_prefetch = 0 : i64, scratch_operands = 4 : i64, tpu.core_type = #tpu.core_type<tc>, window_params = [{transform_indices = @transform_0, window_bounds = array<i64: 2, 6, 3>}, {transform_indices = @transform_1, window_bounds = array<i64: 2, 6, 3>}, {pipeline_mode = #tpu.pipeline_mode<synchronous>, transform_indices = @transform_2, window_bounds = array<i64: 3, 4>}, {pipeline_mode = #tpu.pipeline_mode<synchronous>, transform_indices = @transform_3, window_bounds = array<i64: 3, 8>}, {transform_indices = @transform_4, window_bounds = array<i64: 2, 6, 4>}]} {
    %c6_i32 = arith.constant 6 : i32
    %0 = arith.muli %arg0, %c6_i32 : i32
    %c6_i32_0 = arith.constant 6 : i32
    %1 = arith.muli %arg1, %c6_i32_0 : i32
    %c0_i32 = arith.constant 0 : i32
    %2 = arith.cmpi eq, %arg1, %c0_i32 : i32
    %3 = arith.extui %2 : i1 to i32
    %c0_i32_1 = arith.constant 0 : i32
    %4 = arith.cmpi ne, %3, %c0_i32_1 : i32
    scf.if %4 {
      %c0 = arith.constant 0 : index
      %c0_6 = arith.constant 0 : index
      %c0_7 = arith.constant 0 : index
      %12 = vector.load %arg2[%c0, %c0_6, %c0_7] : memref<2x6x3xf32, #tpu.memory_space<vmem>>, vector<2x6x3xf32>
      %c0_8 = arith.constant 0 : index
      %c0_9 = arith.constant 0 : index
      %13 = vector.load %arg4[%c0_8, %c0_9] : memref<3x4xf32, #tpu.memory_space<vmem>>, vector<3x4xf32>
      "tpu.trace_start"() <{level = 10 : i32, message = "btd,de->bte"}> : () -> ()
      %cst = arith.constant dense<0.000000e+00> : vector<2x6x4xf32>
      %14 = tpu.matmul %12, %13, %cst {dimension_numbers = #tpu.dot_dimension_numbers<[2], [0], [0, 1], [1], [0, 0, 0, 1, 1, 1], [], []>} : vector<2x6x3xf32>, vector<3x4xf32>, vector<2x6x4xf32> -> vector<2x6x4xf32>
      "tpu.trace_stop"() : () -> ()
      %cst_10 = arith.constant 0.707106769 : f32
      %15 = vector.broadcast %cst_10 : f32 to vector<2x6x4xf32>
      %16 = arith.mulf %14, %15 : vector<2x6x4xf32>
      %c0_11 = arith.constant 0 : index
      %c0_12 = arith.constant 0 : index
      %c0_13 = arith.constant 0 : index
      %17 = vector.load %arg7[%c0_11, %c0_12, %c0_13] : memref<2x6x4xf32, #tpu.memory_space<vmem>>, vector<2x6x4xf32>
      tpu.vector_store %arg7[%c0_11, %c0_12, %c0_13], %16 {strides = array<i32>} : memref<2x6x4xf32, #tpu.memory_space<vmem>>, vector<2x6x4xf32>,
      %cst_14 = arith.constant -1.000000e+30 : f32
      %18 = vector.broadcast %cst_14 : f32 to vector<2x2x6x1xf32>
      %c0_15 = arith.constant 0 : index
      %c0_16 = arith.constant 0 : index
      %c0_17 = arith.constant 0 : index
      %c0_18 = arith.constant 0 : index
      %19 = vector.load %arg8[%c0_15, %c0_16, %c0_17, %c0_18] : memref<2x2x6x1xf32, #tpu.memory_space<vmem>>, vector<2x2x6x1xf32>
      tpu.vector_store %arg8[%c0_15, %c0_16, %c0_17, %c0_18], %18 {strides = array<i32>} : memref<2x2x6x1xf32, #tpu.memory_space<vmem>>, vector<2x2x6x1xf32>,
      %cst_19 = arith.constant 0.000000e+00 : f32
      %20 = vector.broadcast %cst_19 : f32 to vector<2x2x6x1xf32>
      %c0_20 = arith.constant 0 : index
      %c0_21 = arith.constant 0 : index
      %c0_22 = arith.constant 0 : index
      %c0_23 = arith.constant 0 : index
      %21 = vector.load %arg9[%c0_20, %c0_21, %c0_22, %c0_23] : memref<2x2x6x1xf32, #tpu.memory_space<vmem>>, vector<2x2x6x1xf32>
      tpu.vector_store %arg9[%c0_20, %c0_21, %c0_22, %c0_23], %20 {strides = array<i32>} : memref<2x2x6x1xf32, #tpu.memory_space<vmem>>, vector<2x2x6x1xf32>,
      %cst_24 = arith.constant 0.000000e+00 : f32
      %22 = vector.broadcast %cst_24 : f32 to vector<2x2x6x2xf32>
      %c0_25 = arith.constant 0 : index
      %c0_26 = arith.constant 0 : index
      %c0_27 = arith.constant 0 : index
      %c0_28 = arith.constant 0 : index
      %23 = vector.load %arg10[%c0_25, %c0_26, %c0_27, %c0_28] : memref<2x2x6x2xf32, #tpu.memory_space<vmem>>, vector<2x2x6x2xf32>
      tpu.vector_store %arg10[%c0_25, %c0_26, %c0_27, %c0_28], %22 {strides = array<i32>} : memref<2x2x6x2xf32, #tpu.memory_space<vmem>>, vector<2x2x6x2xf32>,
    } else {
    }
    %c6_i32_2 = arith.constant 6 : i32
    %5 = arith.addi %0, %c6_i32_2 : i32
    %6 = arith.cmpi slt, %1, %5 : i32
    %7 = arith.extui %6 : i1 to i32
    %c0_i32_3 = arith.constant 0 : i32
    %8 = arith.cmpi ne, %7, %c0_i32_3 : i32
    scf.if %8 {
      %c0 = arith.constant 0 : index
      %c0_6 = arith.constant 0 : index
      %c0_7 = arith.constant 0 : index
      %12 = vector.load %arg3[%c0, %c0_6, %c0_7] : memref<2x6x3xf32, #tpu.memory_space<vmem>>, vector<2x6x3xf32>
      %c0_8 = arith.constant 0 : index
      %c0_9 = arith.constant 0 : index
      %13 = vector.load %arg5[%c0_8, %c0_9] : memref<3x8xf32, #tpu.memory_space<vmem>>, vector<3x8xf32>
      "tpu.trace_start"() <{level = 10 : i32, message = "btd,de->bte"}> : () -> ()
      %cst = arith.constant dense<0.000000e+00> : vector<2x6x8xf32>
      %14 = tpu.matmul %12, %13, %cst {dimension_numbers = #tpu.dot_dimension_numbers<[2], [0], [0, 1], [1], [0, 0, 0, 1, 1, 1], [], []>} : vector<2x6x3xf32>, vector<3x8xf32>, vector<2x6x8xf32> -> vector<2x6x8xf32>
      "tpu.trace_stop"() : () -> ()
      %15 = tpu.iota {dimensions = array<i32: 0>} : vector<6x6xi32>
      %16 = vector.broadcast %0 : i32 to vector<6x6xi32>
      %17 = arith.addi %16, %15 : vector<6x6xi32>
      %18 = tpu.iota {dimensions = array<i32: 1>} : vector<6x6xi32>
      %19 = vector.broadcast %1 : i32 to vector<6x6xi32>
      %20 = arith.addi %19, %18 : vector<6x6xi32>
      %21 = arith.cmpi sgt, %20, %17 : vector<6x6xi32>
      %c0_10 = arith.constant 0 : index
      %c0_11 = arith.constant 0 : index
      %c0_12 = arith.constant 0 : index
      %22 = vector.load %arg7[%c0_10, %c0_11, %c0_12] : memref<2x6x4xf32, #tpu.memory_space<vmem>>, vector<2x6x4xf32>
      %23 = vector.extract_strided_slice %22 {offsets = [0, 0, 0], sizes = [2, 6, 2], strides = [1, 1, 1]} : vector<2x6x4xf32> to vector<2x6x2xf32>
      %24 = vector.extract_strided_slice %14 {offsets = [0, 0, 0], sizes = [2, 6, 2], strides = [1, 1, 1]} : vector<2x6x8xf32> to vector<2x6x2xf32>
      %25 = vector.extract_strided_slice %14 {offsets = [0, 0, 4], sizes = [2, 6, 2], strides = [1, 1, 1]} : vector<2x6x8xf32> to vector<2x6x2xf32>
      "tpu.trace_start"() <{level = 10 : i32, message = "bqe,bke->bqk"}> : () -> ()
      %cst_13 = arith.constant dense<0.000000e+00> : vector<2x6x6xf32>
      %26 = tpu.matmul %23, %24, %cst_13 {dimension_numbers = #tpu.dot_dimension_numbers<[2], [2], [1], [1], [0, 0, 0, 1, 1, 1], [0], [0]>} : vector<2x6x2xf32>, vector<2x6x2xf32>, vector<2x6x6xf32> -> vector<2x6x6xf32>
      "tpu.trace_stop"() : () -> ()
      %27 = vector.shape_cast %21 : vector<6x6xi1> to vector<1x6x6xi1>
      %cst_14 = arith.constant -1.000000e+30 : f32
      %28 = vector.shape_cast %27 : vector<1x6x6xi1> to vector<1x6x6xi1>
      %29 = vector.broadcast %28 : vector<1x6x6xi1> to vector<2x6x6xi1>
      %30 = vector.broadcast %cst_14 : f32 to vector<2x6x6xf32>
      %31 = arith.select %29, %30, %26 : vector<2x6x6xi1>, vector<2x6x6xf32>
      %c0_15 = arith.constant 0 : index
      %c0_16 = arith.constant 0 : index
      %c0_17 = arith.constant 0 : index
      %c0_18 = arith.constant 0 : index
      %32 = vector.load %arg8[%c0_15, %c0_16, %c0_17, %c0_18] : memref<2x2x6x1xf32, #tpu.memory_space<vmem>>, vector<1x2x6x1xf32>
      %33 = vector.shape_cast %32 : vector<1x2x6x1xf32> to vector<2x6x1xf32>
      %cst_19 = arith.constant dense<0xFF800000> : vector<2x6xf32>
      %34 = vector.multi_reduction <maximumf>, %31, %cst_19 [2] : vector<2x6x6xf32> to vector<2x6xf32>
      %35 = vector.shape_cast %34 : vector<2x6xf32> to vector<2x6x1xf32>
      %36 = arith.maximumf %33, %35 : vector<2x6x1xf32>
      %37 = arith.subf %33, %36 : vector<2x6x1xf32>
      %38 = math.exp %37 : vector<2x6x1xf32>
      %39 = vector.broadcast %36 : vector<2x6x1xf32> to vector<2x6x6xf32>
      %40 = arith.subf %31, %39 : vector<2x6x6xf32>
      %41 = math.exp %40 : vector<2x6x6xf32>
      %c0_20 = arith.constant 0 : index
      %c0_21 = arith.constant 0 : index
      %c0_22 = arith.constant 0 : index
      %c0_23 = arith.constant 0 : index
      %42 = vector.load %arg9[%c0_20, %c0_21, %c0_22, %c0_23] : memref<2x2x6x1xf32, #tpu.memory_space<vmem>>, vector<1x2x6x1xf32>
      %43 = vector.shape_cast %42 : vector<1x2x6x1xf32> to vector<2x6x1xf32>
      %44 = arith.mulf %38, %43 : vector<2x6x1xf32>
      %cst_24 = arith.constant dense<0.000000e+00> : vector<2x6xf32>
      %45 = vector.multi_reduction <add>, %41, %cst_24 [2] : vector<2x6x6xf32> to vector<2x6xf32>
      %46 = vector.shape_cast %45 : vector<2x6xf32> to vector<2x6x1xf32>
      %47 = arith.addf %44, %46 : vector<2x6x1xf32>
      %c0_25 = arith.constant 0 : index
      %c0_26 = arith.constant 0 : index
      %c0_27 = arith.constant 0 : index
      %c0_28 = arith.constant 0 : index
      %48 = vector.load %arg9[%c0_25, %c0_26, %c0_27, %c0_28] : memref<2x2x6x1xf32, #tpu.memory_space<vmem>>, vector<1x2x6x1xf32>
      %49 = vector.shape_cast %48 : vector<1x2x6x1xf32> to vector<2x6x1xf32>
      %50 = vector.shape_cast %47 : vector<2x6x1xf32> to vector<1x2x6x1xf32>
      tpu.vector_store %arg9[%c0_25, %c0_26, %c0_27, %c0_28], %50 {strides = array<i32>} : memref<2x2x6x1xf32, #tpu.memory_space<vmem>>, vector<1x2x6x1xf32>,
      %c0_29 = arith.constant 0 : index
      %c0_30 = arith.constant 0 : index
      %c0_31 = arith.constant 0 : index
      %c0_32 = arith.constant 0 : index
      %51 = vector.load %arg10[%c0_29, %c0_30, %c0_31, %c0_32] : memref<2x2x6x2xf32, #tpu.memory_space<vmem>>, vector<1x2x6x2xf32>
      %52 = vector.shape_cast %51 : vector<1x2x6x2xf32> to vector<2x6x2xf32>
      %53 = vector.broadcast %38 : vector<2x6x1xf32> to vector<2x6x2xf32>
      %54 = arith.mulf %53, %52 : vector<2x6x2xf32>
      "tpu.trace_start"() <{level = 10 : i32, message = "bqk,bke->bqe"}> : () -> ()
      %cst_33 = arith.constant dense<0.000000e+00> : vector<2x6x2xf32>
      %55 = tpu.matmul %41, %25, %cst_33 {dimension_numbers = #tpu.dot_dimension_numbers<[2], [1], [1], [2], [0, 0, 0, 1, 1, 2], [0], [0]>} : vector<2x6x6xf32>, vector<2x6x2xf32>, vector<2x6x2xf32> -> vector<2x6x2xf32>
      "tpu.trace_stop"() : () -> ()
      %56 = arith.addf %54, %55 : vector<2x6x2xf32>
      %c0_34 = arith.constant 0 : index
      %c0_35 = arith.constant 0 : index
      %c0_36 = arith.constant 0 : index
      %c0_37 = arith.constant 0 : index
      %57 = vector.load %arg10[%c0_34, %c0_35, %c0_36, %c0_37] : memref<2x2x6x2xf32, #tpu.memory_space<vmem>>, vector<1x2x6x2xf32>
      %58 = vector.shape_cast %57 : vector<1x2x6x2xf32> to vector<2x6x2xf32>
      %59 = vector.shape_cast %56 : vector<2x6x2xf32> to vector<1x2x6x2xf32>
      tpu.vector_store %arg10[%c0_34, %c0_35, %c0_36, %c0_37], %59 {strides = array<i32>} : memref<2x2x6x2xf32, #tpu.memory_space<vmem>>, vector<1x2x6x2xf32>,
      %c0_38 = arith.constant 0 : index
      %c0_39 = arith.constant 0 : index
      %c0_40 = arith.constant 0 : index
      %c0_41 = arith.constant 0 : index
      %60 = vector.load %arg8[%c0_38, %c0_39, %c0_40, %c0_41] : memref<2x2x6x1xf32, #tpu.memory_space<vmem>>, vector<1x2x6x1xf32>
      %61 = vector.shape_cast %60 : vector<1x2x6x1xf32> to vector<2x6x1xf32>
      %62 = vector.shape_cast %36 : vector<2x6x1xf32> to vector<1x2x6x1xf32>
      tpu.vector_store %arg8[%c0_38, %c0_39, %c0_40, %c0_41], %62 {strides = array<i32>} : memref<2x2x6x1xf32, #tpu.memory_space<vmem>>, vector<1x2x6x1xf32>,
      %63 = vector.extract_strided_slice %22 {offsets = [0, 0, 2], sizes = [2, 6, 2], strides = [1, 1, 1]} : vector<2x6x4xf32> to vector<2x6x2xf32>
      %64 = vector.extract_strided_slice %14 {offsets = [0, 0, 2], sizes = [2, 6, 2], strides = [1, 1, 1]} : vector<2x6x8xf32> to vector<2x6x2xf32>
      %65 = vector.extract_strided_slice %14 {offsets = [0, 0, 6], sizes = [2, 6, 2], strides = [1, 1, 1]} : vector<2x6x8xf32> to vector<2x6x2xf32>
      "tpu.trace_start"() <{level = 10 : i32, message = "bqe,bke->bqk"}> : () -> ()
      %cst_42 = arith.constant dense<0.000000e+00> : vector<2x6x6xf32>
      %66 = tpu.matmul %63, %64, %cst_42 {dimension_numbers = #tpu.dot_dimension_numbers<[2], [2], [1], [1], [0, 0, 0, 1, 1, 1], [0], [0]>} : vector<2x6x2xf32>, vector<2x6x2xf32>, vector<2x6x6xf32> -> vector<2x6x6xf32>
      "tpu.trace_stop"() : () -> ()
      %67 = vector.shape_cast %21 : vector<6x6xi1> to vector<1x6x6xi1>
      %cst_43 = arith.constant -1.000000e+30 : f32
      %68 = vector.shape_cast %67 : vector<1x6x6xi1> to vector<1x6x6xi1>
      %69 = vector.broadcast %68 : vector<1x6x6xi1> to vector<2x6x6xi1>
      %70 = vector.broadcast %cst_43 : f32 to vector<2x6x6xf32>
      %71 = arith.select %69, %70, %66 : vector<2x6x6xi1>, vector<2x6x6xf32>
      %c1 = arith.constant 1 : index
      %c0_44 = arith.constant 0 : index
      %c0_45 = arith.constant 0 : index
      %c0_46 = arith.constant 0 : index
      %72 = vector.load %arg8[%c1, %c0_44, %c0_45, %c0_46] : memref<2x2x6x1xf32, #tpu.memory_space<vmem>>, vector<1x2x6x1xf32>
      %73 = vector.shape_cast %72 : vector<1x2x6x1xf32> to vector<2x6x1xf32>
      %cst_47 = arith.constant dense<0xFF800000> : vector<2x6xf32>
      %74 = vector.multi_reduction <maximumf>, %71, %cst_47 [2] : vector<2x6x6xf32> to vector<2x6xf32>
      %75 = vector.shape_cast %74 : vector<2x6xf32> to vector<2x6x1xf32>
      %76 = arith.maximumf %73, %75 : vector<2x6x1xf32>
      %77 = arith.subf %73, %76 : vector<2x6x1xf32>
      %78 = math.exp %77 : vector<2x6x1xf32>
      %79 = vector.broadcast %76 : vector<2x6x1xf32> to vector<2x6x6xf32>
      %80 = arith.subf %71, %79 : vector<2x6x6xf32>
      %81 = math.exp %80 : vector<2x6x6xf32>
      %c1_48 = arith.constant 1 : index
      %c0_49 = arith.constant 0 : index
      %c0_50 = arith.constant 0 : index
      %c0_51 = arith.constant 0 : index
      %82 = vector.load %arg9[%c1_48, %c0_49, %c0_50, %c0_51] : memref<2x2x6x1xf32, #tpu.memory_space<vmem>>, vector<1x2x6x1xf32>
      %83 = vector.shape_cast %82 : vector<1x2x6x1xf32> to vector<2x6x1xf32>
      %84 = arith.mulf %78, %83 : vector<2x6x1xf32>
      %cst_52 = arith.constant dense<0.000000e+00> : vector<2x6xf32>
      %85 = vector.multi_reduction <add>, %81, %cst_52 [2] : vector<2x6x6xf32> to vector<2x6xf32>
      %86 = vector.shape_cast %85 : vector<2x6xf32> to vector<2x6x1xf32>
      %87 = arith.addf %84, %86 : vector<2x6x1xf32>
      %c1_53 = arith.constant 1 : index
      %c0_54 = arith.constant 0 : index
      %c0_55 = arith.constant 0 : index
      %c0_56 = arith.constant 0 : index
      %88 = vector.load %arg9[%c1_53, %c0_54, %c0_55, %c0_56] : memref<2x2x6x1xf32, #tpu.memory_space<vmem>>, vector<1x2x6x1xf32>
      %89 = vector.shape_cast %88 : vector<1x2x6x1xf32> to vector<2x6x1xf32>
      %90 = vector.shape_cast %87 : vector<2x6x1xf32> to vector<1x2x6x1xf32>
      tpu.vector_store %arg9[%c1_53, %c0_54, %c0_55, %c0_56], %90 {strides = array<i32>} : memref<2x2x6x1xf32, #tpu.memory_space<vmem>>, vector<1x2x6x1xf32>,
      %c1_57 = arith.constant 1 : index
      %c0_58 = arith.constant 0 : index
      %c0_59 = arith.constant 0 : index
      %c0_60 = arith.constant 0 : index
      %91 = vector.load %arg10[%c1_57, %c0_58, %c0_59, %c0_60] : memref<2x2x6x2xf32, #tpu.memory_space<vmem>>, vector<1x2x6x2xf32>
      %92 = vector.shape_cast %91 : vector<1x2x6x2xf32> to vector<2x6x2xf32>
      %93 = vector.broadcast %78 : vector<2x6x1xf32> to vector<2x6x2xf32>
      %94 = arith.mulf %93, %92 : vector<2x6x2xf32>
      "tpu.trace_start"() <{level = 10 : i32, message = "bqk,bke->bqe"}> : () -> ()
      %cst_61 = arith.constant dense<0.000000e+00> : vector<2x6x2xf32>
      %95 = tpu.matmul %81, %65, %cst_61 {dimension_numbers = #tpu.dot_dimension_numbers<[2], [1], [1], [2], [0, 0, 0, 1, 1, 2], [0], [0]>} : vector<2x6x6xf32>, vector<2x6x2xf32>, vector<2x6x2xf32> -> vector<2x6x2xf32>
      "tpu.trace_stop"() : () -> ()
      %96 = arith.addf %94, %95 : vector<2x6x2xf32>
      %c1_62 = arith.constant 1 : index
      %c0_63 = arith.constant 0 : index
      %c0_64 = arith.constant 0 : index
      %c0_65 = arith.constant 0 : index
      %97 = vector.load %arg10[%c1_62, %c0_63, %c0_64, %c0_65] : memref<2x2x6x2xf32, #tpu.memory_space<vmem>>, vector<1x2x6x2xf32>
      %98 = vector.shape_cast %97 : vector<1x2x6x2xf32> to vector<2x6x2xf32>
      %99 = vector.shape_cast %96 : vector<2x6x2xf32> to vector<1x2x6x2xf32>
      tpu.vector_store %arg10[%c1_62, %c0_63, %c0_64, %c0_65], %99 {strides = array<i32>} : memref<2x2x6x2xf32, #tpu.memory_space<vmem>>, vector<1x2x6x2xf32>,
      %c1_66 = arith.constant 1 : index
      %c0_67 = arith.constant 0 : index
      %c0_68 = arith.constant 0 : index
      %c0_69 = arith.constant 0 : index
      %100 = vector.load %arg8[%c1_66, %c0_67, %c0_68, %c0_69] : memref<2x2x6x1xf32, #tpu.memory_space<vmem>>, vector<1x2x6x1xf32>
      %101 = vector.shape_cast %100 : vector<1x2x6x1xf32> to vector<2x6x1xf32>
      %102 = vector.shape_cast %76 : vector<2x6x1xf32> to vector<1x2x6x1xf32>
      tpu.vector_store %arg8[%c1_66, %c0_67, %c0_68, %c0_69], %102 {strides = array<i32>} : memref<2x2x6x1xf32, #tpu.memory_space<vmem>>, vector<1x2x6x1xf32>,
    } else {
    }
    %c0_i32_4 = arith.constant 0 : i32
    %9 = arith.cmpi eq, %arg1, %c0_i32_4 : i32
    %10 = arith.extui %9 : i1 to i32
    %c0_i32_5 = arith.constant 0 : i32
    %11 = arith.cmpi ne, %10, %c0_i32_5 : i32
    scf.if %11 {
      %c0 = arith.constant 0 : index
      %c0_6 = arith.constant 0 : index
      %c0_7 = arith.constant 0 : index
      %c0_8 = arith.constant 0 : index
      %12 = vector.load %arg9[%c0, %c0_6, %c0_7, %c0_8] : memref<2x2x6x1xf32, #tpu.memory_space<vmem>>, vector<1x2x6x1xf32>
      %13 = vector.shape_cast %12 : vector<1x2x6x1xf32> to vector<2x6x1xf32>
      %14 = tpu.reciprocal %13 {approx = true} : vector<2x6x1xf32> -> vector<2x6x1xf32>
      %c0_9 = arith.constant 0 : index
      %c0_10 = arith.constant 0 : index
      %c0_11 = arith.constant 0 : index
      %c0_12 = arith.constant 0 : index
      %15 = vector.load %arg10[%c0_9, %c0_10, %c0_11, %c0_12] : memref<2x2x6x2xf32, #tpu.memory_space<vmem>>, vector<1x2x6x2xf32>
      %16 = vector.shape_cast %15 : vector<1x2x6x2xf32> to vector<2x6x2xf32>
      %17 = vector.broadcast %14 : vector<2x6x1xf32> to vector<2x6x2xf32>
      %18 = arith.mulf %16, %17 : vector<2x6x2xf32>
      %c0_13 = arith.constant 0 : index
      %c0_14 = arith.constant 0 : index
      %c0_15 = arith.constant 0 : index
      %19 = vector.load %arg6[%c0_13, %c0_14, %c0_15] : memref<2x6x4xf32, #tpu.memory_space<vmem>>, vector<2x6x2xf32>
      tpu.vector_store %arg6[%c0_13, %c0_14, %c0_15], %18 {strides = array<i32>} : memref<2x6x4xf32, #tpu.memory_space<vmem>>, vector<2x6x2xf32>,
      %c1 = arith.constant 1 : index
      %c0_16 = arith.constant 0 : index
      %c0_17 = arith.constant 0 : index
      %c0_18 = arith.constant 0 : index
      %20 = vector.load %arg9[%c1, %c0_16, %c0_17, %c0_18] : memref<2x2x6x1xf32, #tpu.memory_space<vmem>>, vector<1x2x6x1xf32>
      %21 = vector.shape_cast %20 : vector<1x2x6x1xf32> to vector<2x6x1xf32>
      %22 = tpu.reciprocal %21 {approx = true} : vector<2x6x1xf32> -> vector<2x6x1xf32>
      %c1_19 = arith.constant 1 : index
      %c0_20 = arith.constant 0 : index
      %c0_21 = arith.constant 0 : index
      %c0_22 = arith.constant 0 : index
      %23 = vector.load %arg10[%c1_19, %c0_20, %c0_21, %c0_22] : memref<2x2x6x2xf32, #tpu.memory_space<vmem>>, vector<1x2x6x2xf32>
      %24 = vector.shape_cast %23 : vector<1x2x6x2xf32> to vector<2x6x2xf32>
      %25 = vector.broadcast %22 : vector<2x6x1xf32> to vector<2x6x2xf32>
      %26 = arith.mulf %24, %25 : vector<2x6x2xf32>
      %c0_23 = arith.constant 0 : index
      %c0_24 = arith.constant 0 : index
      %c2 = arith.constant 2 : index
      %27 = vector.load %arg6[%c0_23, %c0_24, %c2] : memref<2x6x4xf32, #tpu.memory_space<vmem>>, vector<2x6x2xf32>
      tpu.vector_store %arg6[%c0_23, %c0_24, %c2], %26 {strides = array<i32>} : memref<2x6x4xf32, #tpu.memory_space<vmem>>, vector<2x6x2xf32>,
    } else {
    }
    return
  }
  func.func @transform_0(%arg0: i32, %arg1: i32) -> (i32, i32, i32) {
    %c0_i32 = arith.constant 0 : i32
    %c0_i32_0 = arith.constant 0 : i32
    %c0_i32_1 = arith.constant 0 : i32
    return %c0_i32, %arg0, %c0_i32_0 : i32, i32, i32
  }
  func.func @transform_1(%arg0: i32, %arg1: i32) -> (i32, i32, i32) {
    %c0_i32 = arith.constant 0 : i32
    %c0_i32_0 = arith.constant 0 : i32
    %c0_i32_1 = arith.constant 0 : i32
    return %c0_i32, %arg1, %c0_i32_0 : i32, i32, i32
  }
  func.func @transform_2(%arg0: i32, %arg1: i32) -> (i32, i32) {
    %c0_i32 = arith.constant 0 : i32
    %c0_i32_0 = arith.constant 0 : i32
    %c0_i32_1 = arith.constant 0 : i32
    return %c0_i32, %c0_i32_0 : i32, i32
  }
  func.func @transform_3(%arg0: i32, %arg1: i32) -> (i32, i32) {
    %c0_i32 = arith.constant 0 : i32
    %c0_i32_0 = arith.constant 0 : i32
    %c0_i32_1 = arith.constant 0 : i32
    return %c0_i32, %c0_i32_0 : i32, i32
  }
  func.func @transform_4(%arg0: i32, %arg1: i32) -> (i32, i32, i32) {
    %c0_i32 = arith.constant 0 : i32
    %c0_i32_0 = arith.constant 0 : i32
    %c0_i32_1 = arith.constant 0 : i32
    return %c0_i32, %arg0, %c0_i32_0 : i32, i32, i32
  }
}

</mosaic_0001>

<bundles_post_ra>
// kernel: tpu_custom_call.1
= control target key start
LH: loop header
LB: loop body
LE: loop exit
PB: predicated region body
PF: predicated region fallthrough
CT: control target
= control target key end

     0   :  { %vm90_vm0 = vcmask 1042432   ;;  %v32_v0 = vlaneseq  ;;  %v1439_v4 = vmov 1983009808   ;;  %vm85_vm1 = vcmask 23552   ;;  %s1446_s25 = smov 122   ;;  %s1447_s26 = smov 2   ;;  %s1686_s2 = inlined_call_operand.vmem [shape: f32[3,4], index: 2, kind: input, shape index: {}]   ;;  %s1687_s0 = inlined_call_operand.vmem [shape: f32[2,6,3], index: 0, kind: input, shape index: {}]   ;;  %s1688_s3 = inlined_call_operand.vmem [shape: f32[3,8], index: 3, kind: input, shape index: {}]   ;;  %s1689_s1 = inlined_call_operand.vmem [shape: f32[2,6,3], index: 1, kind: input, shape index: {}]   ;;  %s1690_s4 = inlined_call_operand.vmem [shape: f32[2,6,4], index: 4, kind: output, shape index: {}]  }
   0x1   :  { %v25_v1 = vld [vmem:[%s1686_s2] sm:$0x7]  ;;  %v24_v3 = vld [vmem:[%s1687_s0 + $0x8] sm:$0x3f]  ;;  %v30_v5 = vunpack.c.l.s4 %v1439_v4  ;;  %v1440_v42 = vmov 0.0   ;;  %vm1441_vm2 = vmmov 0  }
   0x2   :  { %v23_v2 = vld [vmem:[%s1687_s0] sm:$0x3f]  ;;  %1350 = vmatprep.subr.msk.mxu0 %vm90_vm0, %v25_v1  ;;  %v1484_v6 = vshrl.u32 %v32_v0, 7  ;;  %v44_v11 = vcombine.high %v24_v3, %v24_v3  ;;  %v271_v12 = vld [vmem:[%s1689_s1 + $0x8] sm:$0x3f]  ;;  %vm470_vm3 = vcmask 15360  }
   0x3   :  { %v272_v7 = vld [vmem:[%s1688_s3] sm:$0x7]  ;;  %1351 = vmatpush3.msk.msra.mxu0 %vm90_vm0, %v25_v1  ;;  %v28_v9 = vcombine.high %v23_v2, %v23_v2  ;;  %v31_v10 = vunpack.c.0.s8 %v30_v5  ;;  %v291_v14 = vcombine.high %v271_v12, %v271_v12  ;;  %vm248_vm4 = vcmask 29696   ;;  %s1445_s3 = smov 126  }
   0x4   :  { %v270_v8 = vld [vmem:[%s1689_s1] sm:$0x3f]  ;;  %1355 = vmatprep.subr.msk.mxu1 %vm90_vm0, %v272_v7  ;;  %1360 = vmatprep.subr.mxu0 %v1440_v42  ;;  %vm251_vm5 = vcmask 5120   ;;  %vm643_vm7 = vcmask 46080   ;;  %s1444_s1 = smov 124   ;;  %vm709_vm8 = vcmask 1045504  }
   0x5   :  { %1356 = vmatpush3.msk.msra.mxu1 %vm90_vm0, %v272_v7  ;;  %v275_v13 = vcombine.high %v270_v8, %v270_v8  ;;  %v1499_v15 = vsub.s32 %v31_v10, %v1484_v6  ;;  %256 = vst.msk [vmem:[#allocation4] sm:$0x3f] %vm251_vm5, %v1440_v42  ;;  %257 = vst.msk [vmem:[#allocation4 + $0x8] sm:$0x3f] %vm251_vm5, %v1440_v42  ;;  %vm705_vm9 = vcmask 48128   ;;  %vm260_vm10 = vcmask 13312  }
   0x6   :  { %1365 = vmatprep.subr.mxu1 %v1440_v42  ;;  %258 = vst.msk [vmem:[#allocation4 + $0x10] sm:$0x3f] %vm251_vm5, %v1440_v42  ;;  %259 = vst.msk [vmem:[#allocation4 + $0x18] sm:$0x3f] %vm251_vm5, %v1440_v42  ;;  %vm1299_vm11 = vcmask 29712  }
   0x7   :  { %v35_v16 = vrot.slane %v23_v2, %v1499_v15  ;;  %v42_v17 = vrot.slane %v28_v9, %v1499_v15  ;;  %v51_v18 = vrot.slane %v24_v3, %v1499_v15  ;;  %v58_v19 = vrot.slane %v44_v11, %v1499_v15  ;;  %263 = vst.msk [vmem:[#allocation5 + $0x10] sm:$0x3f] %vm260_vm10, %v1440_v42 }
   0x8   :  { %v282_v20 = vrot.slane %v270_v8, %v1499_v15  ;;  %v289_v21 = vrot.slane %v275_v13, %v1499_v15  ;;  %v298_v22 = vrot.slane %v271_v12, %v1499_v15  ;;  %v305_v23 = vrot.slane %v291_v14, %v1499_v15  ;;  %261 = vst.msk [vmem:[#allocation5] sm:$0x3f] %vm260_vm10, %v1440_v42 }
   0x9   :  { %v43_v24 = vcombine.high %v35_v16, %v35_v16  ;;  %v59_v25 = vcombine.high %v51_v18, %v51_v18  ;;  %v61_v26 = vcombine.low %v42_v17, %v51_v18  ;;  %262 = vst.msk [vmem:[#allocation5 + $0x8] sm:$0x3f] %vm260_vm10, %v1440_v42  ;;  %264 = vst.msk [vmem:[#allocation5 + $0x18] sm:$0x3f] %vm260_vm10, %v1440_v42 }
   0xa   :  { %v290_v27 = vcombine.high %v282_v20, %v282_v20  ;;  %v306_v28 = vcombine.high %v298_v22, %v298_v22  ;;  %v308_v29 = vcombine.low %v289_v21, %v298_v22 }
   0xb   :  { %v60_v30 = vcombine.low %v35_v16, %v43_v24  ;;  %v75_v31 = vrot.slane %v61_v26, %v1499_v15  ;;  %v77_v32 = vcombine.low %v59_v25, %v58_v19  ;;  %v1564_v24 = vand.u32 127, %v32_v0 }
   0xc   :  { %v307_v33 = vcombine.low %v282_v20, %v290_v27  ;;  %v322_v34 = vrot.slane %v308_v29, %v1499_v15  ;;  %v324_v35 = vcombine.low %v306_v28, %v305_v23 }
   0xd   :  { %v68_v36 = vrot.slane %v60_v30, %v1499_v15  ;;  %v84_v37 = vrot.slane %v77_v32, %v1499_v15  ;;  %vm451_vm6 = vcmp.gt.s32.totalorder %v1564_v24, %v1484_v6  ;;  %v1443_v32 = vmov 0  }
   0xe   :  { %v315_v38 = vrot.slane %v307_v33, %v1499_v15  ;;  %v331_v40 = vrot.slane %v324_v35, %v1499_v15  ;;  %1409 = vset.pattern.permute.xlu1 %v1443_v32  ;;  %1410 = vset.pattern.permute.xlu0 %v1443_v32 }
   0xf   :  { %v76_v39 = vcombine.low %v68_v36, %v75_v31 }
  0x10   :  { %v323_v41 = vcombine.low %v315_v38, %v322_v34 }
  0x11   :  { %1352 = vmatprep.mubr.msk.f32.mxu0 %vm85_vm1, %v76_v39 }
  0x12   :  { %1353 = vmatmul.mubr.msk.f32.vlgmr.msra.gmra.mrb[0].mxu0 %vm85_vm1, %v84_v37  ;;  %1357 = vmatprep.mubr.msk.f32.mxu1 %vm85_vm1, %v323_v41 }
  0x13   :  { %1358 = vmatmul.mubr.msk.f32.vlgmr.msra.gmra.mrb[0].mxu1 %vm85_vm1, %v331_v40  ;;  %1362 = vmatprep.mubr.msk.f32.mxu0 %vm1441_vm2, %v1440_v42 }
  0x14   :  { %1367 = vmatprep.mubr.msk.f32.mxu1 %vm1441_vm2, %v1440_v42 }
  0xe5   :  { %v1354_v43 = vpop.f32.mrb[0].mxu0 }
  0xe6   :  { %v194_v44 = vrot.slane %v1354_v43, %v1499_v15  ;;  %v160_v45 = vpop.f32.mrb[1].mxu0  ;;  %v1359_v46 = vpop.f32.mrb[0].mxu1 }
  0xe7   :  { %v171_v47 = vcombine.high %v160_v45, %v160_v45  ;;  %v178_v48 = vrot.slane %v160_v45, %v1499_v15  ;;  %v441_v49 = vrot.slane %v1359_v46, %v1499_v15  ;;  %v407_v50 = vpop.f32.mrb[1].mxu1 }
  0xe8   :  { %v418_v51 = vcombine.high %v407_v50, %v407_v50  ;;  %v425_v52 = vrot.slane %v407_v50, %v1499_v15  ;;  %v195_v53 = vcombine.high %v194_v44, %v194_v44  ;;  %v206_v3 = vmul.f32 0.70710677, %v194_v44 }
  0xe9   :  { %v185_v54 = vrot.slane %v171_v47, %v1499_v15  ;;  %v186_v55 = vcombine.high %v178_v48, %v178_v48  ;;  %v442_v56 = vcombine.high %v441_v49, %v441_v49  ;;  %v202_v60 = vmul.f32 0.70710677, %v178_v48 }
  0xea   :  { %v432_v57 = vrot.slane %v418_v51, %v1499_v15  ;;  %v433_v58 = vcombine.high %v425_v52, %v425_v52  ;;  %v207_v4 = vmul.f32 0.70710677, %v195_v53 }
  0xeb   :  { %v187_v59 = vcombine.high %v185_v54, %v185_v54  ;;  %v203_v61 = vmul.f32 0.70710677, %v186_v55  ;;  %v204_v62 = vmul.f32 0.70710677, %v185_v54  ;;  %v560_v8 = vrot.slane %v442_v56, %v1499_v15 }
  0xec   :  { %v434_v63 = vcombine.high %v432_v57, %v432_v57  ;;  %v454_v1 = vcombine.low %v425_v52, %v433_v58  ;;  %v468_v2 = vrot.slane %v432_v57, %v1499_v15  ;;  %v244_v17 = vrot.slane %v207_v4, %v1499_v15 }
  0xed   :  { %v205_v5 = vmul.f32 0.70710677, %v187_v59  ;;  %v214_v7 = vcombine.low %v202_v60, %v203_v61  ;;  %v228_v12 = vrot.slane %v204_v62, %v1499_v15 }
  0xee   :  { %v461_v9 = vrot.slane %v454_v1, %v1499_v15  ;;  %v546_v10 = vcombine.low %v434_v63, %v441_v49 }
  0xef   :  { %v221_v11 = vrot.slane %v214_v7, %v1499_v15  ;;  %v230_v13 = vcombine.low %v205_v5, %v206_v3 }
  0xf0   :  { %v1532_v14 = vcombine.low %v461_v9, %v468_v2  ;;  %v553_v16 = vrot.slane %v546_v10, %v1499_v15 }
  0xf1   :  { %v229_v18 = vcombine.low %v221_v11, %v228_v12  ;;  %v237_v19 = vrot.slane %v230_v13, %v1499_v15  ;;  %v1442_v15 = vmov -1e+30  }
  0xf2   :  { %v1537_v20 = vcombine.low %v553_v16, %v560_v8  ;;  %1361 = vmatpush3.xpose.msk.msra.mxu0 %vm470_vm3, %v1532_v14  ;;  %252 = vst.msk [vmem:[#allocation3] sm:$0x3f] %vm251_vm5, %v1442_v15  ;;  %253 = vst.msk [vmem:[#allocation3 + $0x8] sm:$0x3f] %vm251_vm5, %v1442_v15 }
  0xf3   :  { %v245_v21 = vcombine.low %v237_v19, %v244_v17  ;;  %249 = vst.msk [vmem:[#allocation2] sm:$0x3f] %vm248_vm4, %v229_v18  ;;  %1370 = vmatprep.subr.mxu0 %v1440_v42 }
  0xf4   :  { %1366 = vmatpush3.xpose.msk.msra.mxu1 %vm470_vm3, %v1537_v20  ;;  %254 = vst.msk [vmem:[#allocation3 + $0x10] sm:$0x3f] %vm251_vm5, %v1442_v15  ;;  %255 = vst.msk [vmem:[#allocation3 + $0x18] sm:$0x3f] %vm251_vm5, %v1442_v15 }
  0xf5   :  { %250 = vst.msk [vmem:[#allocation2 + $0x8] sm:$0x3f] %vm248_vm4, %v245_v21  ;;  %1375 = vmatprep.subr.mxu1 %v1440_v42 }
  0xf9   :  { %v1577_v33 = vld [vmem:[#allocation3] sm:$0x3f]  ;;  %v1582_v36 = vld [vmem:[#allocation3 + $0x8] sm:$0x3f] }
  0xfa   :  { %v452_v22 = vld [vmem:[#allocation2] sm:$0x3f] }
  0xfb   :  { %1363 = vmatmul.mubr.msk.f32.vlgmr.msra.gmra.mrb[2].mxu0 %vm470_vm3, %v452_v22  ;;  %v1025_v5 = vld [vmem:[#allocation3 + $0x10] sm:$0x3f]  ;;  %v1026_v9 = vld [vmem:[#allocation3 + $0x18] sm:$0x3f] }
  0xfc   :  { %v453_v23 = vld [vmem:[#allocation2 + $0x8] sm:$0x3f]  ;;  %1372 = vmatprep.mubr.msk.f32.mxu0 %vm1441_vm2, %v1440_v42 }
  0xfd   :  { %1368 = vmatmul.mubr.msk.f32.vlgmr.msra.gmra.mrb[2].mxu1 %vm470_vm3, %v453_v23 }
  0xfe   :  { %1377 = vmatprep.mubr.msk.f32.mxu1 %vm1441_vm2, %v1440_v42 }
 0x1ce   :  { %v542_v25 = vpop.f32.mrb[2].mxu0 }
 0x1cf   :  { %v639_v26 = vsel %vm451_vm6, -1e+30, %v542_v25  ;;  %v1364_v27 = vpop.f32.mrb[3].mxu0 }
 0x1d0   :  { %v633_v28 = vpop.f32.mrb[2].mxu1  ;;  %v644_v29 = vsel %vm643_vm7, %v639_v26, -inf }
 0x1d1   :  { %v640_v30 = vsel %vm451_vm6, -1e+30, %v633_v28  ;;  %645 = vmax.xlane.f32.xlu0 %v644_v29  ;;  %v1369_v0 = vpop.f32.mrb[3].mxu1 }
 0x1d2   :  { %v647_v31 = vsel %vm643_vm7, %v640_v30, -inf }
 0x1d5   :  { %648 = vmax.xlane.f32.xlu0 %v647_v31 }
 0x1eb   :  { %703 = vrot.lane.b32.xlu0 %v1532_v14, %s1444_s1 }
 0x25e   :  { %v646_v34 = vpop.xlane.xlu0 %645 }
 0x25f   :  { %v1580_v35 = vmax.f32 %v1577_v33, %v646_v34 }
 0x261   :  { %v652_v37 = vsub.f32 %v1577_v33, %v1580_v35  ;;  %864 = vst.msk [vmem:[#allocation3] sm:$0x3f] %vm251_vm5, %v1580_v35  ;;  %660 = vperm.xlu1 %1409, %v1580_v35   ;;  %v1058_v33 = vld [vmem:[#allocation4 + $0x10] sm:$0x3f] }
 0x262   :  { %v649_v38 = vpop.xlane.xlu0 %648 }
 0x263   :  { %v1590_v39 = vmax.f32 %v1582_v36, %v649_v38  ;;  %v654_v29 = vmul.f32 1.442695, %v652_v37  ;;  %v674_v37 = vld [vmem:[#allocation4] sm:$0x3f]  ;;  %v1059_v38 = vld [vmem:[#allocation4 + $0x18] sm:$0x3f] }
 0x265   :  { %v653_v40 = vsub.f32 %v1582_v36, %v1590_v39  ;;  %865 = vst.msk [vmem:[#allocation3 + $0x8] sm:$0x3f] %vm251_vm5, %v1590_v39  ;;  %665 = vperm.xlu1 %1409, %v1590_v39  }
 0x266   :  { %v704_v41 = vpop.permute.xlu0 %703 }
 0x267   :  { %1371 = vmatpush3.msk.msra.mxu0 %vm709_vm8, %v704_v41  ;;  %v656_v32 = vmul.f32 1.442695, %v653_v40 }
 0x268   :  { %1380 = vmatprep.subr.mxu0 %v1440_v42 }
 0x269   :  { %782 = vrot.lane.b32.xlu1 %v1537_v20, %s1444_s1 }
 0x26d   :  { %868 = vrot.lane.b32.xlu1 %v1532_v14, %s1445_s3 }
 0x271   :  { %946 = vrot.lane.b32.xlu1 %v1537_v20, %s1445_s3 }
 0x275   :  { %866 = vrot.lane.b32.xlu1 %v452_v22, %s1445_s3 }
 0x279   :  { %944 = vrot.lane.b32.xlu1 %v453_v23, %s1445_s3 }
 0x2e0   :  { %v661_v43 = vpop.permute.xlu1 %660 }
 0x2e1   :  { %v668_v44 = vsub.f32 %v639_v26, %v661_v43 }
 0x2e3   :  { %v670_v45 = vmul.f32 1.442695, %v668_v44 }
 0x2e4   :  { %v666_v46 = vpop.permute.xlu1 %665 }
 0x2e5   :  { %1415 = vpow2.f32 %v670_v45  ;;  %v669_v47 = vsub.f32 %v640_v30, %v666_v46 }
 0x2e7   :  { %v672_v48 = vmul.f32 1.442695, %v669_v47  ;;  %v675_v47 = vld [vmem:[#allocation4 + $0x8] sm:$0x3f] }
 0x2e8   :  { %v783_v49 = vpop.permute.xlu1 %782 }
 0x2e9   :  { %1417 = vpow2.f32 %v672_v48  ;;  %1376 = vmatpush3.msk.msra.mxu1 %vm709_vm8, %v783_v49 }
 0x2ea   :  { %1385 = vmatprep.subr.mxu1 %v1440_v42 }
 0x2ec   :  { %v869_v50 = vpop.permute.xlu1 %868 }
 0x2ef   :  { %v1604_v51 = vpop.eup %1415 }
 0x2f0   :  { %v947_v52 = vpop.permute.xlu1 %946  ;;  %1373 = vmatmul.mubr.msk.f32.vlgmr.msra.gmra.mrb[4].mxu0 %vm705_vm9, %v1604_v51  ;;  %v678_v25 = vsel %vm643_vm7, %v1604_v51, 0.0 }
 0x2f1   :  { %1381 = vmatpush3.xpose.msk.msra.mxu0 %vm470_vm3, %v869_v50  ;;  %1382 = vmatprep.mubr.msk.f32.mxu0 %vm1441_vm2, %v1440_v42 }
 0x2f2   :  { %1390 = vmatprep.subr.mxu0 %v1440_v42 }
 0x2f3   :  { %v1418_v53 = vpop.eup %1417 }
 0x2f4   :  { %1378 = vmatmul.mubr.msk.f32.vlgmr.msra.gmra.mrb[4].mxu1 %vm705_vm9, %v1418_v53  ;;  %v867_v54 = vpop.permute.xlu1 %866  ;;  %v681_v26 = vsel %vm643_vm7, %v1418_v53, 0.0 }
 0x2f5   :  { %1386 = vmatpush3.xpose.msk.msra.mxu1 %vm470_vm3, %v947_v52  ;;  %1383 = vmatmul.mubr.msk.f32.vlgmr.msra.gmra.mrb[6].mxu0 %vm470_vm3, %v867_v54  ;;  %v689_v52 = vld [vmem:[#allocation5] sm:$0x3f] }
 0x2f6   :  { %1387 = vmatprep.mubr.msk.f32.mxu1 %vm1441_vm2, %v1440_v42  ;;  %1395 = vmatprep.subr.mxu1 %v1440_v42 }
 0x2f7   :  { %1392 = vmatprep.mubr.msk.f32.mxu0 %vm1441_vm2, %v1440_v42 }
 0x2f8   :  { %v945_v55 = vpop.permute.xlu1 %944 }
 0x2f9   :  { %1388 = vmatmul.mubr.msk.f32.vlgmr.msra.gmra.mrb[6].mxu1 %vm470_vm3, %v945_v55 }
 0x2fa   :  { %1397 = vmatprep.mubr.msk.f32.mxu1 %vm1441_vm2, %v1440_v42 }
 0x3c3   :  { %v1623_v56 = vpop.f32.mrb[4].mxu0 }
 0x3c4   :  { %v1374_v57 = vpop.f32.mrb[5].mxu0 }
 0x3c7   :  { %v1625_v58 = vpop.f32.mrb[4].mxu1 }
 0x3c8   :  { %v1379_v59 = vpop.f32.mrb[5].mxu1  ;;  %v940_v60 = vpop.f32.mrb[6].mxu0 }
 0x3c9   :  { %v1022_v61 = vsel %vm451_vm6, -1e+30, %v940_v60  ;;  %v1384_v62 = vpop.f32.mrb[7].mxu0 }
 0x3ca   :  { %v1027_v63 = vsel %vm643_vm7, %v1022_v61, -inf }
 0x3cb   :  { %1028 = vmax.xlane.f32.xlu1 %v1027_v63 }
 0x3cc   :  { %v1018_v1 = vpop.f32.mrb[6].mxu1 }
 0x3cd   :  { %v1023_v2 = vsel %vm451_vm6, -1e+30, %v1018_v1  ;;  %v1389_v3 = vpop.f32.mrb[7].mxu1 }
 0x3ce   :  { %v1030_v4 = vsel %vm643_vm7, %v1023_v2, -inf }
 0x3cf   :  { %1031 = vmax.xlane.f32.xlu0 %v1030_v4 }
 0x458   :  { %v1029_v7 = vpop.xlane.xlu1 %1028 }
 0x459   :  { %v1033_v8 = vmax.f32 %v1025_v5, %v1029_v7 }
 0x45b   :  { %v1035_v10 = vsub.f32 %v1025_v5, %v1033_v8  ;;  %1245 = vst.msk [vmem:[#allocation3 + $0x10] sm:$0x3f] %vm251_vm5, %v1033_v8  ;;  %1043 = vperm.xlu0 %1410, %v1033_v8   ;;  %v1074_v5 = vld [vmem:[#allocation5 + $0x18] sm:$0x3f] }
 0x45c   :  { %v1032_v11 = vpop.xlane.xlu0 %1031 }
 0x45d   :  { %v1034_v12 = vmax.f32 %v1026_v9, %v1032_v11  ;;  %v1037_v27 = vmul.f32 1.442695, %v1035_v10 }
 0x45f   :  { %v1036_v13 = vsub.f32 %v1026_v9, %v1034_v12  ;;  %1246 = vst.msk [vmem:[#allocation3 + $0x18] sm:$0x3f] %vm251_vm5, %v1034_v12  ;;  %1048 = vperm.xlu1 %1409, %v1034_v12  }
 0x461   :  { %v1039_v28 = vmul.f32 1.442695, %v1036_v13 }
 0x463   :  { %1087 = vrot.lane.b32.xlu1 %v1532_v14, %s1446_s25 }
 0x467   :  { %1164 = vrot.lane.b32.xlu1 %v1537_v20, %s1446_s25 }
 0x4da   :  { %v1044_v6 = vpop.permute.xlu0 %1043 }
 0x4db   :  { %v1051_v16 = vsub.f32 %v1022_v61, %v1044_v6 }
 0x4dd   :  { %v1053_v17 = vmul.f32 1.442695, %v1051_v16 }
 0x4de   :  { %v1049_v18 = vpop.permute.xlu1 %1048 }
 0x4df   :  { %1419 = vpow2.f32 %v1053_v17  ;;  %v1052_v19 = vsub.f32 %v1023_v2, %v1049_v18  ;;  %v1073_v2 = vld [vmem:[#allocation5 + $0x10] sm:$0x3f] }
 0x4e1   :  { %v1055_v21 = vmul.f32 1.442695, %v1052_v19 }
 0x4e2   :  { %v1088_v22 = vpop.permute.xlu1 %1087 }
 0x4e3   :  { %1421 = vpow2.f32 %v1055_v21  ;;  %1391 = vmatpush3.msk.msra.mxu0 %vm709_vm8, %v1088_v22 }
 0x4e4   :  { %1423 = vpow2.f32 %v1037_v27 }
 0x4e5   :  { %1425 = vpow2.f32 %v1039_v28 }
 0x4e6   :  { %v1165_v23 = vpop.permute.xlu1 %1164  ;;  %1427 = vpow2.f32 %v654_v29 }
 0x4e7   :  { %1396 = vmatpush3.msk.msra.mxu1 %vm709_vm8, %v1165_v23  ;;  %1429 = vpow2.f32 %v656_v32 }
 0x4e9   :  { %v1420_v15 = vpop.eup %1419 }
 0x4ea   :  { %1393 = vmatmul.mubr.msk.f32.vlgmr.msra.gmra.mrb[8].mxu0 %vm705_vm9, %v1420_v15  ;;  %v1062_v14 = vsel %vm643_vm7, %v1420_v15, 0.0  ;;  %v690_v15 = vld [vmem:[#allocation5 + $0x8] sm:$0x3f] }
 0x4eb   :  { %1063 = vadd.xlane.f32.xlu1 %v1062_v14 }
 0x4ed   :  { %v1422_v20 = vpop.eup %1421 }
 0x4ee   :  { %1398 = vmatmul.mubr.msk.f32.vlgmr.msra.gmra.mrb[8].mxu1 %vm705_vm9, %v1422_v20  ;;  %v1065_v24 = vsel %vm643_vm7, %v1422_v20, 0.0  ;;  %v1424_v30 = vpop.eup %1423 }
 0x4ef   :  { %1066 = vadd.xlane.f32.xlu0 %v1065_v24  ;;  %679 = vadd.xlane.f32.xlu1 %v678_v25  ;;  %v1426_v0 = vpop.eup %1425  ;;  %v1060_v34 = vmul.f32 %v1424_v30, %v1058_v33 }
 0x4f0   :  { %v1428_v31 = vpop.eup %1427  ;;  %v1061_v43 = vmul.f32 %v1426_v0, %v1059_v38 }
 0x4f1   :  { %v676_v42 = vmul.f32 %v1428_v31, %v674_v37  ;;  %v1430_v44 = vpop.eup %1429 }
 0x4f2   :  { %v677_v36 = vmul.f32 %v1430_v44, %v675_v47 }
 0x4f3   :  { %682 = vadd.xlane.f32.xlu1 %v681_v26 }
 0x504   :  { %1077 = vperm.xlu1 %1409, %v1424_v30  }
 0x505   :  { %1082 = vperm.xlu0 %1410, %v1426_v0  }
 0x509   :  { %693 = vperm.xlu0 %1410, %v1428_v31  }
 0x578   :  { %v1064_v35 = vpop.xlane.xlu1 %1063 }
 0x579   :  { %v1068_v41 = vadd.f32 %v1064_v35, %v1060_v34 }
 0x57b   :  { %1070 = vst.msk [vmem:[#allocation4 + $0x10] sm:$0x3f] %vm251_vm5, %v1068_v41 }
 0x57c   :  { %v680_v45 = vpop.xlane.xlu1 %679  ;;  %v1067_v46 = vpop.xlane.xlu0 %1066 }
 0x57d   :  { %v684_v48 = vadd.f32 %v680_v45, %v676_v42  ;;  %v1069_v49 = vadd.f32 %v1067_v46, %v1061_v43 }
 0x57f   :  { %687 = vst.msk [vmem:[#allocation4] sm:$0x3f] %vm251_vm5, %v684_v48  ;;  %1071 = vst.msk [vmem:[#allocation4 + $0x18] sm:$0x3f] %vm251_vm5, %v1069_v49 }
 0x580   :  { %v683_v39 = vpop.xlane.xlu1 %682 }
 0x581   :  { %v685_v40 = vadd.f32 %v683_v39, %v677_v36 }
 0x582   :  { %v1272_v50 = vld [vmem:[#allocation4 + $0x10] sm:$0x3f] }
 0x583   :  { %688 = vst.msk [vmem:[#allocation4 + $0x8] sm:$0x3f] %vm251_vm5, %v685_v40  ;;  %1431 = vrcp.f32 %v1272_v50 }
 0x584   :  { %v1083_v51 = vpop.permute.xlu0 %1082  ;;  %v1078_v3 = vpop.permute.xlu1 %1077 }
 0x585   :  { %v1085_v4 = vmul.f32 %v1078_v3, %v1073_v2  ;;  %v1086_v9 = vmul.f32 %v1083_v51, %v1074_v5 }
 0x586   :  { %v1250_v53 = vld [vmem:[#allocation4] sm:$0x3f]  ;;  %v1273_v54 = vld [vmem:[#allocation4 + $0x18] sm:$0x3f] }
 0x587   :  { %1433 = vrcp.f32 %v1250_v53 }
 0x588   :  { %v694_v55 = vpop.permute.xlu0 %693  ;;  %1435 = vrcp.f32 %v1273_v54 }
 0x589   :  { %v701_v57 = vmul.f32 %v694_v55, %v689_v52 }
 0x58a   :  { %v1251_v61 = vld [vmem:[#allocation4 + $0x8] sm:$0x3f] }
 0x58b   :  { %v859_v59 = vadd.f32 %v1623_v56, %v701_v57  ;;  %1437 = vrcp.f32 %v1251_v61 }
 0x58d   :  { %v1432_v60 = vpop.eup %1431  ;;  %862 = vst.msk [vmem:[#allocation5] sm:$0x3f] %vm260_vm10, %v859_v59 }
 0x58e   :  { %1281 = vperm.xlu1 %1409, %v1432_v60  }
 0x591   :  { %v1434_v62 = vpop.eup %1433 }
 0x592   :  { %v1436_v63 = vpop.eup %1435  ;;  %1258 = vperm.xlu0 %1410, %v1434_v62  }
 0x593   :  { %1286 = vperm.xlu1 %1409, %v1436_v63  }
 0x594   :  { %v1254_v17 = vld [vmem:[#allocation5] sm:$0x3f] }
 0x595   :  { %v1438_v1 = vpop.eup %1437 }
 0x597   :  { %698 = vperm.xlu1 %1409, %v1430_v44  }
 0x59b   :  { %1263 = vperm.xlu1 %1409, %v1438_v1  }
 0x5bd   :  { %v1160_v7 = vpop.f32.mrb[8].mxu0 }
 0x5be   :  { %v1241_v8 = vadd.f32 %v1160_v7, %v1085_v4  ;;  %v1394_v56 = vpop.f32.mrb[9].mxu0 }
 0x5c0   :  { %1243 = vst.msk [vmem:[#allocation5 + $0x10] sm:$0x3f] %vm260_vm10, %v1241_v8 }
 0x5c1   :  { %v1237_v10 = vpop.f32.mrb[8].mxu1 }
 0x5c2   :  { %v1242_v11 = vadd.f32 %v1237_v10, %v1086_v9  ;;  %v1399_v12 = vpop.f32.mrb[9].mxu1 }
 0x5c4   :  { %1244 = vst.msk [vmem:[#allocation5 + $0x18] sm:$0x3f] %vm260_vm10, %v1242_v11 }
 0x5c7   :  { %v1277_v13 = vld [vmem:[#allocation5 + $0x10] sm:$0x3f] }
 0x5cb   :  { %v1278_v21 = vld [vmem:[#allocation5 + $0x18] sm:$0x3f] }
 0x60d   :  { %v1282_v6 = vpop.permute.xlu1 %1281 }
 0x60e   :  { %v1289_v16 = vmul.f32 %v1282_v6, %v1277_v13 }
 0x610   :  { %1293 = vrot.lane.b32.xlu0 %v1289_v16, %s1447_s26 }
 0x611   :  { %v1259_v18 = vpop.permute.xlu0 %1258 }
 0x612   :  { %v1287_v19 = vpop.permute.xlu1 %1286  ;;  %v1266_v22 = vmul.f32 %v1259_v18, %v1254_v17 }
 0x613   :  { %v1290_v23 = vmul.f32 %v1287_v19, %v1278_v21 }
 0x614   :  { %1269 = vst.msk [vmem:[%s1690_s4] sm:$0x3f] %vm260_vm10, %v1266_v22 }
 0x615   :  { %1295 = vrot.lane.b32.xlu1 %v1290_v23, %s1447_s26 }
 0x616   :  { %v699_v14 = vpop.permute.xlu1 %698 }
 0x617   :  { %v702_v20 = vmul.f32 %v699_v14, %v690_v15 }
 0x619   :  { %v860_v24 = vadd.f32 %v1625_v58, %v702_v20 }
 0x61a   :  { %v1264_v26 = vpop.permute.xlu1 %1263 }
 0x61b   :  { %863 = vst.msk [vmem:[#allocation5 + $0x8] sm:$0x3f] %vm260_vm10, %v860_v24 }
 0x622   :  { %v1255_v25 = vld [vmem:[#allocation5 + $0x8] sm:$0x3f] }
 0x623   :  { %v1267_v27 = vmul.f32 %v1264_v26, %v1255_v25 }
 0x625   :  { %1270 = vst.msk [vmem:[%s1690_s4 + $0x8] sm:$0x3f] %vm260_vm10, %v1267_v27 }
 0x682   :  { %v1294_v28 = vpop.permute.xlu0 %1293 }
 0x683   :  { %1300 = vst.msk [vmem:[%s1690_s4] sm:$0x3f] %vm1299_vm11, %v1294_v28 }
 0x687   :  { %v1296_v29 = vpop.permute.xlu1 %1295 }
 0x688   :  { %1301 = vst.msk [vmem:[%s1690_s4 + $0x8] sm:$0x3f] %vm1299_vm11, %v1296_v29 }

</bundles_post_ra>
